<compile_context>
chip_gen: v5e
topology: v5e:2x2
jax: 0.10.0
libtpu: 0.0.40
codegen_flags: <defaults>
</compile_context>

<pallas_src>
import functools

import jax
import jax.numpy as jnp
import numpy as np
from jax.experimental import pallas as pl
from jax.experimental.pallas import tpu as pltpu


# ---------------------------------------------------------------------------
# Shared quantization math (used by the kernel body AND the tiny tail path,
# guaranteeing bit-identical results between the two).
# ---------------------------------------------------------------------------
def _quant_math(x_f32, *, a, b, inv_scale, rounding, handle_overflow,
                clip_min, clip_max):
    y = x_f32 * a                                   # shift + scale folded
    if b != 0.0:
        y = y + b
    q = jnp.round(y) if rounding else jnp.floor(y)
    q = q * inv_scale
    if handle_overflow:
        # wrap into [-1, 1):  mod(q+1, 2) - 1, written with an exact *0.5/floor
        w = q + 1.0
        q = (w - 2.0 * jnp.floor(w * 0.5)) - 1.0
    return jnp.clip(q, clip_min, clip_max)


# ---------------------------------------------------------------------------
# Kernel (elementwise; HBM-bound, all math hides under DMA in VPU/EUP slack)
# ---------------------------------------------------------------------------
def _quant_kernel(x_ref, o_ref, *, a, b, inv_scale, rounding,
                  handle_overflow, clip_min, clip_max):
    x = x_ref[...].astype(jnp.float32)              # upcast once, in vregs
    q = _quant_math(x, a=a, b=b, inv_scale=inv_scale, rounding=rounding,
                    handle_overflow=handle_overflow,
                    clip_min=clip_min, clip_max=clip_max)
    o_ref[...] = q.astype(o_ref.dtype)              # write back in native dtype


# ---------------------------------------------------------------------------
# Wrapper
# ---------------------------------------------------------------------------
_LANES = 128
_WIDTHS = (4096, 2048, 1024, 512, 256, 128)   # lane-dense slab widths
_TARGET_BLOCK_BYTES = 4 << 20                 # ~4 MiB per block buffer
_MULTIBLOCK_THRESHOLD = 2 << 20               # slabs above this get >=4 grid steps
_VMEM_LIMIT_BYTES = 48 << 20                  # covers 2x(in+out)x4MiB on every gen


def quantization_forward(x, *, bitwith, mean=0.0, std=1.0, divisor=1.0,
                         handle_overflow=False, rounding=True,
                         clip_min=-1.0, clip_max=1.0):
    """Pallas TPU forward of the Quantization module.

    x: any shape / float dtype.  Quantization parameters must be static
    Python scalars (they are baked into the kernel at trace time).
    """
    orig_shape = x.shape
    orig_dtype = x.dtype
    n = int(np.prod(orig_shape)) if orig_shape else 1
    itemsize = int(jnp.dtype(orig_dtype).itemsize)

    # ---- fold distribution shift + quantization scale at trace time
    scale = 2.0 ** (int(bitwith) - 1)
    apply_shift = not (mean == 0 and std == 1 and divisor == 1)
    a = scale / (float(std) * float(divisor)) if apply_shift else scale
    b = (-float(mean) * a) if apply_shift else 0.0
    qargs = dict(a=float(a), b=float(b), inv_scale=float(1.0 / scale),
                 rounding=bool(rounding), handle_overflow=bool(handle_overflow),
                 clip_min=float(clip_min), clip_max=float(clip_max))

    flat = jnp.ravel(x)
    n_bulk = (n // _LANES) * _LANES

    if n_bulk == 0:
        # <128 elements total: a kernel launch is pure overhead.
        out = _quant_math(flat.astype(jnp.float32), **qargs).astype(orig_dtype)
        return out.reshape(orig_shape)

    # ---- lane-dense 2-D layout; only the 128-aligned bulk goes to the kernel
    bulk = flat if n_bulk == n else flat[:n_bulk]
    width = next(w for w in _WIDTHS if n_bulk % w == 0)
    rows = n_bulk // width
    x2d = bulk.reshape(rows, width)

    # ---- tile size: dtype-aware ~4 MiB blocks; rows multiple of 32 (covers
    #      f32/bf16/int8 sublane packing).  For slabs > 2 MiB, cap the block so
    #      the grid has >= 4 steps (keeps both v7x TensorCores streaming and
    #      the pipeline double-buffered); partial last block handled by Pallas.
    tile_rows = max(32, (_TARGET_BLOCK_BYTES // (width * itemsize)) // 32 * 32)
    slab_bytes = rows * width * itemsize
    if slab_bytes > _MULTIBLOCK_THRESHOLD:
        cap_rows = max(32, (rows // 4) // 32 * 32)
        tile_rows = min(tile_rows, cap_rows)
    if tile_rows >= rows:
        tile_rows = rows                       # single block == full array dims
    grid = (pl.cdiv(rows, tile_rows),)

    kernel = functools.partial(_quant_kernel, **qargs)

    out2d = pl.pallas_call(
        kernel,
        out_shape=jax.ShapeDtypeStruct((rows, width), orig_dtype),
        grid_spec=pltpu.PrefetchScalarGridSpec(
            num_scalar_prefetch=0,
            grid=grid,
            in_specs=[pl.BlockSpec((tile_rows, width), lambda i: (i, 0))],
            out_specs=pl.BlockSpec((tile_rows, width), lambda i: (i, 0)),
        ),
        compiler_params=pltpu.CompilerParams(
            dimension_semantics=("parallel",),   # lets v7x split across both TCs
            vmem_limit_bytes=_VMEM_LIMIT_BYTES), # 4 MiB blocks exceed v5e's 16 MiB default
    )(x2d)

    if n_bulk == n:
        return out2d.reshape(orig_shape)

    # Rare non-aligned case: tiny (<128-elem) tail computed with the identical
    # formula; one output-sized concat remains (no full-tensor pad/unpad passes).
    tail_out = _quant_math(flat[n_bulk:].astype(jnp.float32),
                           **qargs).astype(orig_dtype)
    return jnp.concatenate([out2d.reshape(-1), tail_out]).reshape(orig_shape)


# ---------------------------------------------------------------------------
# Pure-JAX reference (mirrors the PyTorch module literally)
# ---------------------------------------------------------------------------
def _reference(x, *, bitwith, mean=0.0, std=1.0, divisor=1.0,
               handle_overflow=False, rounding=True,
               clip_min=-1.0, clip_max=1.0):
    x = x.astype(jnp.float32)
    if not (mean == 0 and std == 1 and divisor == 1):
        x = (x - mean) / (std * divisor)
    scale = 2.0 ** (int(bitwith) - 1)
    q = jnp.round(x * scale) if rounding else jnp.floor(x * scale)
    q = q / scale
    if handle_overflow:
        q = jnp.mod(q + 1.0, 2.0) - 1.0
    return jnp.clip(q, clip_min, clip_max)


if __name__ == "__main__":
    key = jax.random.PRNGKey(0)
    k1, k2, k3, k4, k5 = jax.random.split(key, 5)

    # --- case 1: f32 NCHW, distribution shift + round-half-to-even ---------
    p1 = dict(bitwith=8, mean=0.25, std=2.0, divisor=1.0,
              handle_overflow=False, rounding=True, clip_min=-1.0, clip_max=1.0)
    x1 = jax.random.normal(k1, (2, 4, 16, 16), dtype=jnp.float32)
    o1 = jax.block_until_ready(quantization_forward(x1, **p1))
    r1 = _reference(x1, **p1)
    np.testing.assert_allclose(np.asarray(o1), np.asarray(r1), rtol=0, atol=1e-6)

    # --- case 2: integer-overflow wrap + floor rounding ---------------------
    p2 = dict(bitwith=4, mean=0.0, std=1.0, divisor=1.0,
              handle_overflow=True, rounding=False, clip_min=-1.0, clip_max=0.875)
    x2 = 3.0 * jax.random.normal(k2, (8, 32), dtype=jnp.float32)
    o2 = jax.block_until_ready(quantization_forward(x2, **p2))
    r2 = _reference(x2, **p2)
    np.testing.assert_allclose(np.asarray(o2), np.asarray(r2), rtol=0, atol=1e-6)

    # --- case 3: bf16 native I/O (half HBM traffic), f32 math inside --------
    p3 = dict(bitwith=8, mean=0.0, std=1.0, divisor=1.0,
              handle_overflow=False, rounding=True, clip_min=-1.0, clip_max=1.0)
    x3 = jax.random.normal(k3, (2, 4, 16, 16), dtype=jnp.bfloat16)
    o3 = jax.block_until_ready(quantization_forward(x3, **p3))
    r3 = _reference(x3, **p3).astype(jnp.bfloat16)
    np.testing.assert_allclose(np.asarray(o3.astype(jnp.float32)),
                               np.asarray(r3.astype(jnp.float32)),
                               rtol=0, atol=1e-6)

    # --- case 4: element count not a multiple of 128 (bulk kernel + tail) ---
    p4 = dict(bitwith=6, mean=0.0, std=1.0, divisor=1.0,
              handle_overflow=False, rounding=True, clip_min=-1.0, clip_max=1.0)
    x4 = jax.random.normal(k4, (7, 19), dtype=jnp.float32)
    o4 = jax.block_until_ready(quantization_forward(x4, **p4))
    r4 = _reference(x4, **p4)
    np.testing.assert_allclose(np.asarray(o4), np.asarray(r4), rtol=0, atol=1e-6)

    # --- case 5: multi-block grid path (slab > 2 MiB -> >= 4 grid steps) ----
    p5 = dict(bitwith=8, mean=0.25, std=2.0, divisor=1.0,
              handle_overflow=False, rounding=True, clip_min=-1.0, clip_max=1.0)
    x5 = jax.random.normal(k5, (512, 2048), dtype=jnp.float32)
    o5 = jax.block_until_ready(quantization_forward(x5, **p5))
    r5 = _reference(x5, **p5)
    np.testing.assert_allclose(np.asarray(o5), np.asarray(r5), rtol=0, atol=1e-6)

    print("KERNEL_OK")
</pallas_src>

<mosaic_0001>
module attributes {stable_mosaic.version = 11 : i64} {
  func.func @_quant_kernel(%arg0: i32, %arg1: memref<1x2048xf32, #tpu.memory_space<vmem>>, %arg2: memref<1x2048xf32, #tpu.memory_space<vmem>>) attributes {dimension_semantics = [#tpu.dimension_semantics<parallel>], iteration_bounds = array<i64: 1>, scalar_prefetch = 0 : i64, scratch_operands = 0 : i64, tpu.core_type = #tpu.core_type<tc>, window_params = [{transform_indices = @transform_0, window_bounds = array<i64: 1, 2048>}, {transform_indices = @transform_1, window_bounds = array<i64: 1, 2048>}]} {
    %c0 = arith.constant 0 : index
    %c0_0 = arith.constant 0 : index
    %0 = vector.load %arg1[%c0, %c0_0] : memref<1x2048xf32, #tpu.memory_space<vmem>>, vector<1x2048xf32>
    %cst = arith.constant 6.400000e+01 : f32
    %1 = vector.broadcast %cst : f32 to vector<1x2048xf32>
    %2 = arith.mulf %0, %1 : vector<1x2048xf32>
    %cst_1 = arith.constant -1.600000e+01 : f32
    %3 = vector.broadcast %cst_1 : f32 to vector<1x2048xf32>
    %4 = arith.addf %2, %3 : vector<1x2048xf32>
    %5 = math.roundeven %4 : vector<1x2048xf32>
    %cst_2 = arith.constant 7.812500e-03 : f32
    %6 = vector.broadcast %cst_2 : f32 to vector<1x2048xf32>
    %7 = arith.mulf %5, %6 : vector<1x2048xf32>
    %cst_3 = arith.constant -1.000000e+00 : f32
    %cst_4 = arith.constant 1.000000e+00 : f32
    %8 = vector.broadcast %cst_3 : f32 to vector<1x2048xf32>
    %9 = arith.maximumf %8, %7 : vector<1x2048xf32>
    %10 = vector.broadcast %cst_4 : f32 to vector<1x2048xf32>
    %11 = arith.minimumf %10, %9 : vector<1x2048xf32>
    %c0_5 = arith.constant 0 : index
    %c0_6 = arith.constant 0 : index
    %12 = vector.load %arg2[%c0_5, %c0_6] : memref<1x2048xf32, #tpu.memory_space<vmem>>, vector<1x2048xf32>
    tpu.vector_store %arg2[%c0_5, %c0_6], %11 {strides = array<i32>} : memref<1x2048xf32, #tpu.memory_space<vmem>>, vector<1x2048xf32>,
    return
  }
  func.func @transform_0(%arg0: i32) -> (i32, i32) {
    %c0_i32 = arith.constant 0 : i32
    %c0_i32_0 = arith.constant 0 : i32
    return %arg0, %c0_i32 : i32, i32
  }
  func.func @transform_1(%arg0: i32) -> (i32, i32) {
    %c0_i32 = arith.constant 0 : i32
    %c0_i32_0 = arith.constant 0 : i32
    return %arg0, %c0_i32 : i32, i32
  }
}

</mosaic_0001>

<bundles_post_ra>
// kernel: tpu_custom_call.1
= control target key start
LH: loop header
LB: loop body
LE: loop exit
PB: predicated region body
PF: predicated region fallthrough
CT: control target
= control target key end

     0   :  { %6 = vsyncpa [#allocation3], 0  ;;  %s146_s0 = inlined_call_operand.hbm [shape: f32[1,2048], index: 0, kind: input, shape index: {}]   ;;  %s147_s1 = inlined_call_operand.hbm [shape: f32[1,2048], index: 1, kind: output, shape index: {}]  }
   0x1   :  { %7 = vsyncpa [#allocation4], 0  ;;  %s13_s8 = sshll.u32 %s146_s0, 4  ;;  %s128_s9 = smov [#allocation2]   ;;  %s14_s8 = int_to_ptr.hbm [resolvable:$true] %s13_s8 }
   0x2   :  { %s15_s10 = sshll.u32 %s128_s9, 4  ;;  %s16_s10 = int_to_ptr.vmem [resolvable:$true] %s15_s10 }
   0x3   :  { %18 = dma.hbm_to_vmem [thread:$0]  %s14_s8, 256, %s16_s10, [#allocation3]  }
   0x4   :  { %124 = dma.done.wait [#allocation3], 256  }
   0x5   :  { %125 = vsyncadd [#allocation3], 4294967040  ;;  %v23_v0 = vld [vmem:[#allocation2] sm:$0xff]  ;;  %v24_v1 = vld [vmem:[#allocation2 + $0x8] sm:$0xff]  ;;  %s129_s0 = smov [#allocation5]   ;;  %s46_s14 = sshll.u32 %s147_s1, 4  ;;  %s47_s14 = int_to_ptr.hbm [resolvable:$true] %s46_s14 }
   0x6   :  { %v25_v2 = vmul.f32 64.0, %v23_v0  ;;  %v26_v3 = vmul.f32 64.0, %v24_v1  ;;  %s44_s11 = sshll.u32 %s129_s0, 4  ;;  %s45_s11 = int_to_ptr.vmem [resolvable:$true] %s44_s11 }
   0x8   :  { %v27_v4 = vadd.f32 -16.0, %v25_v2  ;;  %v28_v5 = vadd.f32 -16.0, %v26_v3 }
   0xa   :  { %v60_v6 = vcvt.f32.s32 %v27_v4  ;;  %v58_v7 = vand.u32 2147483647, %v27_v4  ;;  %v68_v8 = vcvt.f32.s32 %v28_v5  ;;  %v63_v10 = vand.u32 2147483648, %v27_v4 }
   0xb   :  { %v66_v11 = vand.u32 2147483647, %v28_v5  ;;  %v71_v13 = vand.u32 2147483648, %v28_v5 }
   0xc   :  { %v61_v9 = vcvt.s32.f32 %v60_v6  ;;  %v69_v12 = vcvt.s32.f32 %v68_v8  ;;  %vm59_vm0 = vcmp.lt.f32.partialorder %v58_v7, 8388608.0 }
   0xd   :  { %vm67_vm1 = vcmp.lt.f32.partialorder %v66_v11, 8388608.0 }
   0xe   :  { %v62_v14 = vand.u32 2147483647, %v61_v9  ;;  %v70_v15 = vand.u32 2147483647, %v69_v12 }
  0x10   :  { %v64_v16 = vor.u32 %v63_v10, %v62_v14  ;;  %v72_v17 = vor.u32 %v71_v13, %v70_v15 }
  0x12   :  { %v65_v18 = vsel %vm59_vm0, %v64_v16, %v27_v4  ;;  %v73_v20 = vsel %vm67_vm1, %v72_v17, %v28_v5 }
  0x13   :  { %v31_v19 = vmul.f32 0.0078125, %v65_v18  ;;  %v32_v21 = vmul.f32 0.0078125, %v73_v20 }
  0x15   :  { %v56_v22 = vclamps-f32 %v31_v19, 1.0  ;;  %v57_v23 = vclamps-f32 %v32_v21, 1.0 }
  0x17   :  { %37 = vst [vmem:[#allocation5] sm:$0xff] %v56_v22 }
  0x18   :  { %38 = vst [vmem:[#allocation5 + $0x8] sm:$0xff] %v57_v23 }
  0x19   :  { %49 = dma.vmem_to_hbm [thread:$0]  %s45_s11, 256, %s47_s14, [#allocation4]  }
  0x1a   :  { %126 = dma.done.wait [#allocation4], 256  }
  0x1b   :  { %127 = vsyncadd [#allocation4], 4294967040 }
  0x1c   :  { %54 = vsyncpa [#allocation3], 1 }
  0x1d   :  { %55 = vsyncpa [#allocation4], 1 }

</bundles_post_ra>
